<compile_context>
chip_gen: v7x
topology: tpu7x:2x2x1
jax: 0.10.0
libtpu: 0.0.40
codegen_flags: <defaults>
</compile_context>

<pallas_src>
import functools

import jax
import jax.numpy as jnp
from jax.experimental import pallas as pl
from jax.experimental.pallas import tpu as pltpu


def _round_up(x, m):
    return ((x + m - 1) // m) * m


def _cdiv(a, b):
    return (a + b - 1) // b


# In-kernel working-set target (fits the scoped-VMEM ceiling on every
# generation, incl. v7x's 64 MiB physical per TensorCore) and the explicit
# scoped-VMEM limit handed to Mosaic.
_VMEM_WORKSET_BUDGET = 32 * 1024 * 1024
_VMEM_LIMIT_BYTES = 48 * 1024 * 1024


# ----------------------------------------------------------------------------
# Pallas kernel: fused pair-feature 3-layer MLP, edge dim on lanes.
# ----------------------------------------------------------------------------
def _mlp_decoder_kernel(z_ref, w1_ref, b1_ref, w2_ref, b2_ref,
                        w3_ref, b3_ref, out_ref, *, latent_dim):
    # z_ref: (2D, TE) bf16 — [z_i ; z_j] stacked on sublanes, edges on lanes.
    z = z_ref[...].astype(jnp.float32)
    zi = z[:latent_dim, :]                               # (D, TE)
    zj = z[latent_dim:, :]                               # (D, TE)

    # Pair features along the contracting (sublane) axis -> (4D, TE); same
    # ordering as torch.cat([z_i, z_j, |z_i - z_j|, z_i * z_j], dim=-1).
    feats = jnp.concatenate([zi, zj, jnp.abs(zi - zj), zi * zj], axis=0)

    # Layer 1: (H, 4D) @ (4D, TE) -> (H, TE), single K=4D MXU pass.
    h = jnp.dot(w1_ref[...], feats, preferred_element_type=jnp.float32) + b1_ref[...]
    h = jnp.maximum(h, 0.0)

    # Layer 2: (H, H) @ (H, TE) -> (H, TE)
    h = jnp.dot(w2_ref[...], h, preferred_element_type=jnp.float32) + b2_ref[...]
    h = jnp.maximum(h, 0.0)

    # Layer 3: (1, H) @ (H, TE) -> (1, TE) — lane-dense output store.
    out_ref[...] = (jnp.dot(w3_ref[...], h, preferred_element_type=jnp.float32)
                    + b3_ref[...])


def _choose_edge_tile(E, D, H, te_max):
    """Pick the edge-tile width from a VMEM working-set budget."""
    per_col = (2 * (2 * D) * 2        # double-buffered bf16 z stream
               + 2 * 1 * 4            # double-buffered f32 output row
               + (2 * D) * 4          # f32 upcast of the z tile
               + (4 * D) * 4          # feats temp
               + 2 * H * 4)           # two hidden-activation tiles
    te = min(te_max, _VMEM_WORKSET_BUDGET // per_col)
    te = (te // 128) * 128
    # Keep >= ~4 edge tiles so ("parallel",) can shard the grid across the two
    # TensorCores on v7x (no-op cost on v5e/v6e single-TC chips).
    te_cap = _round_up(max(_cdiv(E, 4), 1), 128)
    return max(128, min(te, te_cap))


def mlp_decoder_pallas(z_src, z_dst, src_idx, dst_idx, params, *, te_max=32768):
    """Fused pair-feature MLP decoder.

    z_src: (N_src, D) f32 node embeddings, z_dst: (N_dst, D) f32.
    src_idx, dst_idx: (E,) int32 local row indices (one per edge).
    params: W1 (4D,H), b1 (H,), W2 (H,H), b2 (H,), W3 (H,1), b3 (1,)
            (x @ W layout, i.e. transposed vs torch nn.Linear.weight).
    returns: (E,) float32
    """
    E = int(src_idx.shape[0])
    D = int(z_src.shape[1])
    W1, b1 = params["W1"], params["b1"]
    W2, b2 = params["W2"], params["b2"]
    W3, b3 = params["W3"], params["b3"]
    H = int(W1.shape[1])

    if E == 0:
        return jnp.zeros((0,), jnp.float32)

    te = _choose_edge_tile(E, D, H, te_max)
    e_pad = _round_up(E, te)

    # Pad only the small int32 index vectors (no jnp.pad pass over big data).
    # Padded edges gather row 0 and produce garbage columns; this is safe
    # ONLY because every output column depends solely on its own input column
    # and out[:, :E] slices the padding off.
    if e_pad != E:
        src_idx = jnp.pad(src_idx, (0, e_pad - E))
        dst_idx = jnp.pad(dst_idx, (0, e_pad - E))

    # Row gather (sublane-friendly), then stack z_i / z_j into one bf16
    # (2D, e_pad) stream: edges on lanes, halved HBM bytes for the dominant
    # traffic, clean (16,128) bf16 packing when D == 8.
    zi = jnp.take(z_src, src_idx, axis=0)                 # (e_pad, D)
    zj = jnp.take(z_dst, dst_idx, axis=0)                 # (e_pad, D)
    z_pair = jnp.concatenate([zi, zj], axis=1).astype(jnp.bfloat16).T  # (2D, e_pad)
    # TODO(synk): for very large E, fold this gather into the kernel (node
    # tables resident in VMEM + per-tile indices) so the gathered stream is
    # not written to and re-read from HBM.

    # Weights transposed so the edge/lane axis is the matmul N dimension;
    # kept in f32 (tiny, VMEM-resident, negligible HBM traffic).
    w1_t = W1.T                       # (H, 4D)
    w2_t = W2.T                       # (H, H)
    w3_t = W3.T                       # (1, H)
    b1_c = b1.reshape(H, 1)
    b2_c = b2.reshape(H, 1)
    b3_c = b3.reshape(1, 1)

    grid = (e_pad // te,)

    z_spec = pl.BlockSpec((2 * D, te), lambda i: (0, i))

    def const_spec(shape):
        # Same block every grid step -> stays resident in VMEM.
        return pl.BlockSpec(shape, lambda i: (0, 0))

    cost = pl.CostEstimate(
        flops=2 * e_pad * (4 * D * H + H * H + H),
        transcendentals=0,
        bytes_accessed=(2 * D) * e_pad * 2          # bf16 z stream
        + e_pad * 4                                  # f32 output row
        + (w1_t.size + w2_t.size + w3_t.size + 2 * H + 1) * 4,
    )

    kernel = functools.partial(_mlp_decoder_kernel, latent_dim=D)

    out = pl.pallas_call(
        kernel,
        out_shape=jax.ShapeDtypeStruct((1, e_pad), jnp.float32),
        grid=grid,
        in_specs=[
            z_spec,
            const_spec((H, 4 * D)), const_spec((H, 1)),
            const_spec((H, H)), const_spec((H, 1)),
            const_spec((1, H)), const_spec((1, 1)),
        ],
        out_specs=pl.BlockSpec((1, te), lambda i: (0, i)),
        compiler_params=pltpu.CompilerParams(
            dimension_semantics=("parallel",),
            vmem_limit_bytes=_VMEM_LIMIT_BYTES),
        cost_estimate=cost,
    )(z_pair, w1_t, b1_c, w2_t, b2_c, w3_t, b3_c)

    return out[0, :E]


# ----------------------------------------------------------------------------
# Glue: global-id -> local-index lookup (the Python-dict lookup in the PyTorch
# forward), done with sort + searchsorted on small index arrays.
# ----------------------------------------------------------------------------
def _global_to_local(n_id, global_ids):
    order = jnp.argsort(n_id)
    sorted_ids = n_id[order]
    pos = jnp.searchsorted(sorted_ids, global_ids)
    pos = jnp.clip(pos, 0, n_id.shape[0] - 1)
    # TODO(synk): ids absent from n_id map silently to a wrong row (the torch
    # dict lookup would raise); traced JAX cannot raise data-dependently.
    return order[pos].astype(jnp.int32)


def mlp_decoder_forward(z_dict, edge_index, src_type, dst_type, params):
    src_global, dst_global = edge_index[0], edge_index[1]
    z_src, _, _, n_id_src = z_dict[src_type]
    z_dst, _, _, n_id_dst = z_dict[dst_type]

    src_idx = _global_to_local(n_id_src, src_global)
    dst_idx = _global_to_local(n_id_dst, dst_global)

    return mlp_decoder_pallas(z_src, z_dst, src_idx, dst_idx, params)


# ----------------------------------------------------------------------------
# Pure-JAX reference (mirrors the PyTorch MLPDecoder math, full f32).
# ----------------------------------------------------------------------------
def mlp_decoder_reference(z_i, z_j, params):
    feats = jnp.concatenate([z_i, z_j, jnp.abs(z_i - z_j), z_i * z_j], axis=-1)
    h = jnp.maximum(feats @ params["W1"] + params["b1"], 0.0)
    h = jnp.maximum(h @ params["W2"] + params["b2"], 0.0)
    return (h @ params["W3"] + params["b3"])[:, 0]


# ----------------------------------------------------------------------------
# Deterministic parameter init (MLPDecoder.__init__ with latent_dim=D,
# input_dim=4*D, hidden_dim=H, num_layers=3).
# ----------------------------------------------------------------------------
def init_params(key, latent_dim, hidden_dim):
    input_dim = 4 * latent_dim
    k1, k2, k3, k4, k5, k6 = jax.random.split(key, 6)
    scale = 0.1
    return {
        "W1": scale * jax.random.normal(k1, (input_dim, hidden_dim), jnp.float32),
        "b1": scale * jax.random.normal(k2, (hidden_dim,), jnp.float32),
        "W2": scale * jax.random.normal(k3, (hidden_dim, hidden_dim), jnp.float32),
        "b2": scale * jax.random.normal(k4, (hidden_dim,), jnp.float32),
        "W3": scale * jax.random.normal(k5, (hidden_dim, 1), jnp.float32),
        "b3": scale * jax.random.normal(k6, (1,), jnp.float32),
    }


if __name__ == "__main__":
    key = jax.random.PRNGKey(0)
    k_param, k_zsrc, k_zdst, k_perm_s, k_perm_d, k_es, k_ed = jax.random.split(key, 7)

    latent_dim = 8       # D
    hidden_dim = 32      # H
    n_src, n_dst = 10, 12
    E = 16               # number of edges

    params = init_params(k_param, latent_dim, hidden_dim)

    # Node embeddings + global-id lists (z_dict entries: (z, mu, logstd, n_id);
    # only z and n_id are used by the decoder).
    z_src = jax.random.normal(k_zsrc, (n_src, latent_dim), jnp.float32)
    z_dst = jax.random.normal(k_zdst, (n_dst, latent_dim), jnp.float32)
    n_id_src = jax.random.permutation(k_perm_s, jnp.arange(100, 100 + n_src, dtype=jnp.int32))
    n_id_dst = jax.random.permutation(k_perm_d, jnp.arange(200, 200 + n_dst, dtype=jnp.int32))

    z_dict = {
        "user": (z_src, z_src, z_src, n_id_src),
        "item": (z_dst, z_dst, z_dst, n_id_dst),
    }

    # Edges given in *global* ids (sampled from the n_id lists).
    src_sel = jax.random.randint(k_es, (E,), 0, n_src)
    dst_sel = jax.random.randint(k_ed, (E,), 0, n_dst)
    edge_index = jnp.stack([n_id_src[src_sel], n_id_dst[dst_sel]], axis=0)

    out = mlp_decoder_forward(z_dict, edge_index, "user", "item", params)
    out = jax.block_until_ready(out)
    assert out.shape == (E,)

    # Reference with the same bf16 input quantization the kernel applies
    # (tight check of the kernel math) ...
    q = lambda x: x.astype(jnp.bfloat16).astype(jnp.float32)
    ref_q = mlp_decoder_reference(q(z_src[src_sel]), q(z_dst[dst_sel]), params)
    assert jnp.allclose(out, ref_q, atol=1e-2, rtol=1e-2), (out, ref_q)

    # ... plus a sanity check against the full-precision f32 reference.
    ref_full = mlp_decoder_reference(z_src[src_sel], z_dst[dst_sel], params)
    assert jnp.allclose(out, ref_full, atol=5e-2, rtol=5e-2), (out, ref_full)

    print("KERNEL_OK")
</pallas_src>

<mosaic_0001>
module attributes {stable_mosaic.version = 11 : i64} {
  func.func @_mlp_decoder_kernel(%arg0: i32, %arg1: memref<16x128xbf16, #tpu.memory_space<vmem>>, %arg2: memref<32x32xf32, #tpu.memory_space<vmem>>, %arg3: memref<32x1xf32, #tpu.memory_space<vmem>>, %arg4: memref<32x32xf32, #tpu.memory_space<vmem>>, %arg5: memref<32x1xf32, #tpu.memory_space<vmem>>, %arg6: memref<1x32xf32, #tpu.memory_space<vmem>>, %arg7: memref<1x1xf32, #tpu.memory_space<vmem>>, %arg8: memref<1x128xf32, #tpu.memory_space<vmem>>) attributes {dimension_semantics = [#tpu.dimension_semantics<parallel>], iteration_bounds = array<i64: 1>, scalar_prefetch = 0 : i64, scratch_operands = 0 : i64, tpu.core_type = #tpu.core_type<tc>, window_params = [{transform_indices = @transform_0, window_bounds = array<i64: 16, 128>}, {pipeline_mode = #tpu.pipeline_mode<synchronous>, transform_indices = @transform_1, window_bounds = array<i64: 32, 32>}, {pipeline_mode = #tpu.pipeline_mode<synchronous>, transform_indices = @transform_2, window_bounds = array<i64: 32, 1>}, {pipeline_mode = #tpu.pipeline_mode<synchronous>, transform_indices = @transform_3, window_bounds = array<i64: 32, 32>}, {pipeline_mode = #tpu.pipeline_mode<synchronous>, transform_indices = @transform_4, window_bounds = array<i64: 32, 1>}, {pipeline_mode = #tpu.pipeline_mode<synchronous>, transform_indices = @transform_5, window_bounds = array<i64: 1, 32>}, {pipeline_mode = #tpu.pipeline_mode<synchronous>, transform_indices = @transform_6, window_bounds = array<i64: 1, 1>}, {transform_indices = @transform_7, window_bounds = array<i64: 1, 128>}]} {
    %c0 = arith.constant 0 : index
    %c0_0 = arith.constant 0 : index
    %0 = vector.load %arg1[%c0, %c0_0] : memref<16x128xbf16, #tpu.memory_space<vmem>>, vector<16x128xbf16>
    %1 = arith.extf %0 : vector<16x128xbf16> to vector<16x128xf32>
    %2 = vector.extract_strided_slice %1 {offsets = [0, 0], sizes = [8, 128], strides = [1, 1]} : vector<16x128xf32> to vector<8x128xf32>
    %3 = vector.extract_strided_slice %1 {offsets = [8, 0], sizes = [8, 128], strides = [1, 1]} : vector<16x128xf32> to vector<8x128xf32>
    %4 = arith.subf %2, %3 : vector<8x128xf32>
    %5 = math.absf %4 : vector<8x128xf32>
    %6 = arith.mulf %2, %3 : vector<8x128xf32>
    %7 = tpu.concatenate %2, %3, %5, %6 in 0 : vector<8x128xf32>, vector<8x128xf32>, vector<8x128xf32>, vector<8x128xf32> -> vector<32x128xf32>
    %c0_1 = arith.constant 0 : index
    %c0_2 = arith.constant 0 : index
    %8 = vector.load %arg2[%c0_1, %c0_2] : memref<32x32xf32, #tpu.memory_space<vmem>>, vector<32x32xf32>
    %cst = arith.constant dense<0.000000e+00> : vector<32x128xf32>
    %9 = tpu.matmul %8, %7, %cst {dimension_numbers = #tpu.dot_dimension_numbers<[1], [0], [0], [1], [0, 0, 1, 1], [], []>} : vector<32x32xf32>, vector<32x128xf32>, vector<32x128xf32> -> vector<32x128xf32>
    %c0_3 = arith.constant 0 : index
    %c0_4 = arith.constant 0 : index
    %10 = vector.load %arg3[%c0_3, %c0_4] : memref<32x1xf32, #tpu.memory_space<vmem>>, vector<32x1xf32>
    %11 = vector.broadcast %10 : vector<32x1xf32> to vector<32x128xf32>
    %12 = arith.addf %9, %11 : vector<32x128xf32>
    %cst_5 = arith.constant 0.000000e+00 : f32
    %13 = vector.broadcast %cst_5 : f32 to vector<32x128xf32>
    %14 = arith.maximumf %12, %13 : vector<32x128xf32>
    %c0_6 = arith.constant 0 : index
    %c0_7 = arith.constant 0 : index
    %15 = vector.load %arg4[%c0_6, %c0_7] : memref<32x32xf32, #tpu.memory_space<vmem>>, vector<32x32xf32>
    %cst_8 = arith.constant dense<0.000000e+00> : vector<32x128xf32>
    %16 = tpu.matmul %15, %14, %cst_8 {dimension_numbers = #tpu.dot_dimension_numbers<[1], [0], [0], [1], [0, 0, 1, 1], [], []>} : vector<32x32xf32>, vector<32x128xf32>, vector<32x128xf32> -> vector<32x128xf32>
    %c0_9 = arith.constant 0 : index
    %c0_10 = arith.constant 0 : index
    %17 = vector.load %arg5[%c0_9, %c0_10] : memref<32x1xf32, #tpu.memory_space<vmem>>, vector<32x1xf32>
    %18 = vector.broadcast %17 : vector<32x1xf32> to vector<32x128xf32>
    %19 = arith.addf %16, %18 : vector<32x128xf32>
    %cst_11 = arith.constant 0.000000e+00 : f32
    %20 = vector.broadcast %cst_11 : f32 to vector<32x128xf32>
    %21 = arith.maximumf %19, %20 : vector<32x128xf32>
    %c0_12 = arith.constant 0 : index
    %c0_13 = arith.constant 0 : index
    %22 = vector.load %arg6[%c0_12, %c0_13] : memref<1x32xf32, #tpu.memory_space<vmem>>, vector<1x32xf32>
    %cst_14 = arith.constant dense<0.000000e+00> : vector<1x128xf32>
    %23 = tpu.matmul %22, %21, %cst_14 {dimension_numbers = #tpu.dot_dimension_numbers<[1], [0], [0], [1], [0, 0, 1, 1], [], []>} : vector<1x32xf32>, vector<32x128xf32>, vector<1x128xf32> -> vector<1x128xf32>
    %c0_15 = arith.constant 0 : index
    %c0_16 = arith.constant 0 : index
    %24 = vector.load %arg7[%c0_15, %c0_16] : memref<1x1xf32, #tpu.memory_space<vmem>>, vector<1x1xf32>
    %25 = vector.broadcast %24 : vector<1x1xf32> to vector<1x128xf32>
    %26 = arith.addf %23, %25 : vector<1x128xf32>
    %c0_17 = arith.constant 0 : index
    %c0_18 = arith.constant 0 : index
    %27 = vector.load %arg8[%c0_17, %c0_18] : memref<1x128xf32, #tpu.memory_space<vmem>>, vector<1x128xf32>
    tpu.vector_store %arg8[%c0_17, %c0_18], %26 {strides = array<i32>} : memref<1x128xf32, #tpu.memory_space<vmem>>, vector<1x128xf32>,
    return
  }
  func.func @transform_0(%arg0: i32) -> (i32, i32) {
    %c0_i32 = arith.constant 0 : i32
    %c0_i32_0 = arith.constant 0 : i32
    return %c0_i32, %arg0 : i32, i32
  }
  func.func @transform_1(%arg0: i32) -> (i32, i32) {
    %c0_i32 = arith.constant 0 : i32
    %c0_i32_0 = arith.constant 0 : i32
    %c0_i32_1 = arith.constant 0 : i32
    return %c0_i32, %c0_i32_0 : i32, i32
  }
  func.func @transform_2(%arg0: i32) -> (i32, i32) {
    %c0_i32 = arith.constant 0 : i32
    %c0_i32_0 = arith.constant 0 : i32
    %c0_i32_1 = arith.constant 0 : i32
    return %c0_i32, %c0_i32_0 : i32, i32
  }
  func.func @transform_3(%arg0: i32) -> (i32, i32) {
    %c0_i32 = arith.constant 0 : i32
    %c0_i32_0 = arith.constant 0 : i32
    %c0_i32_1 = arith.constant 0 : i32
    return %c0_i32, %c0_i32_0 : i32, i32
  }
  func.func @transform_4(%arg0: i32) -> (i32, i32) {
    %c0_i32 = arith.constant 0 : i32
    %c0_i32_0 = arith.constant 0 : i32
    %c0_i32_1 = arith.constant 0 : i32
    return %c0_i32, %c0_i32_0 : i32, i32
  }
  func.func @transform_5(%arg0: i32) -> (i32, i32) {
    %c0_i32 = arith.constant 0 : i32
    %c0_i32_0 = arith.constant 0 : i32
    %c0_i32_1 = arith.constant 0 : i32
    return %c0_i32, %c0_i32_0 : i32, i32
  }
  func.func @transform_6(%arg0: i32) -> (i32, i32) {
    %c0_i32 = arith.constant 0 : i32
    %c0_i32_0 = arith.constant 0 : i32
    %c0_i32_1 = arith.constant 0 : i32
    return %c0_i32, %c0_i32_0 : i32, i32
  }
  func.func @transform_7(%arg0: i32) -> (i32, i32) {
    %c0_i32 = arith.constant 0 : i32
    %c0_i32_0 = arith.constant 0 : i32
    return %c0_i32, %arg0 : i32, i32
  }
}

</mosaic_0001>

<bundles_post_ra>
// kernel: tpu_custom_call.1
= control target key start
LH: loop header
LB: loop body
LE: loop exit
PB: predicated region body
PF: predicated region fallthrough
CT: control target
= control target key end

     0   :  { %s697_s0 = inlined_call_operand.hbm [shape: bf16[16,128], index: 0, kind: input, shape index: {}]   ;;  %s698_s1 = inlined_call_operand.vmem [shape: f32[32,32], index: 1, kind: input, shape index: {}]   ;;  %s699_s2 = inlined_call_operand.vmem [shape: f32[32,1], index: 2, kind: input, shape index: {}]   ;;  %s700_s3 = inlined_call_operand.vmem [shape: f32[32,32], index: 3, kind: input, shape index: {}]   ;;  %s701_s4 = inlined_call_operand.vmem [shape: f32[32,1], index: 4, kind: input, shape index: {}]   ;;  %s702_s5 = inlined_call_operand.vmem [shape: f32[1,32], index: 5, kind: input, shape index: {}]   ;;  %s703_s6 = inlined_call_operand.<no memory space> [shape: f32[1,1], index: 6, kind: input, shape index: {}]   ;;  %s704_s7 = inlined_call_operand.hbm [shape: f32[1,128], index: 7, kind: output, shape index: {}]  }
   0x1   :  { %v12_v0 = vstv %s703_s6 }
   0x2   :  { %13 = vst [vmem:[#allocation2] sm:$0x1] %v12_v0 }
   0x3   :  { %14 = vsyncpa [#allocation4], 0 }
   0x4   :  { %15 = vsyncpa [#allocation5], 0  ;;  %s562_s26 = smov [#allocation3]   ;;  %s514_s30 = scalar_lea.hbm %s697_s0, 128 }
   0x5   :  { %s21_s27 = sshll.u32 %s562_s26, 4  ;;  %p515_p0 = scmp.ne.s32.totalorder %s697_s0, %s514_s30  ;;  %s22_s27 = int_to_ptr.vmem [resolvable:$true] %s21_s27 }
   0x6   :  { %p518_p1 = scmp.lt.u32.totalorder %s514_s30, %s697_s0 }
   0x8   :  { %p520_p2 = pnand %p518_p1, %p515_p0 }
   0xa   :  { %523 = shalt.err (!%p520_p2)
}
   0xb   :  { %s524_s6 = scalar_lea.vmem %s22_s27, 128  ;;  %p529_p4 = scmp.lt.s32.totalorder %s22_s27, %s22_s27 }
   0xc   :  { %p525_p3 = scmp.ne.s32.totalorder %s22_s27, %s524_s6  ;;  %p530_p5 = scmp.lt.s32.totalorder %s524_s6, %s524_s6 }
   0xe   :  { %p531_p6 = por %p530_p5, %p529_p4 }
  0x10   :  { %p532_p7 = pnand %p531_p6, %p525_p3 }
  0x12   :  { %535 = shalt.err (!%p532_p7)
}
  0x13   :  { %s563_s12 = smov 64   ;;  %s564_s13 = smov 4  }
  0x14   :  { %27 = dma.hbm_to_vmem [thread:$0]  %s697_s0, 128, %s22_s27, [#allocation4], %s563_s12, %s563_s12, %s564_s13  }
  0x15   :  { %558 = dma.done.wait [#allocation4], 128  }
  0x16   :  { %559 = vsyncadd [#allocation4], 4294967168  ;;  %v565_v1 = vmov 0   ;;  %vm78_vm0 = vcmask 261120   ;;  %v419_v2 = vld [vmem:[#allocation3] sm:$0xff]   ;;  %v56_v7 = vld [vmem:[%s699_s2 + $0x10] sm:$0xff] }
  0x17   :  { %512 = vset.pattern.permute.xlu0 %v565_v1  ;;  %513 = vset.pattern.permute.xlu1 %v565_v1  ;;  %v50_v3 = vld [vmem:[%s698_s1] sm:$0xff]  ;;  %v420_v4 = vunpack.c.l.bf16 %v419_v2  ;;  %v421_v5 = vunpack.c.h.bf16 %v419_v2  ;;  %v55_v10 = vld [vmem:[%s699_s2 + $0x8] sm:$0xff]  ;;  %v57_v11 = vld [vmem:[%s699_s2 + $0x18] sm:$0xff]  ;;  %v566_v44 = vmov 0.0|0.0   ;;  %vm567_vm1 = vmmov 0   ;;  %s569_s20 = smov [#allocation6]  }
  0x18   :  { %483 = vmatprep.subr.bf16.mxu0 %v419_v2  ;;  %451 = vmatprep.mubr.msk.f32.mxu0 %vm78_vm0, %v50_v3  ;;  %v54_v6 = vld [vmem:[%s699_s2] sm:$0xff]  ;;  %v185_v15 = vld [vmem:[%s701_s4 + $0x8] sm:$0xff]  ;;  %v52_v17 = vld [vmem:[%s698_s1 + $0x10] sm:$0xff]  ;;  %v568_v45 = vmov 0.0   ;;  %v316_v1 = vlaneseq  ;;  %s400_s21 = sshll.u32 %s569_s20, 4  ;;  %s401_s21 = int_to_ptr.vmem [resolvable:$true] %s400_s21 }
  0x19   :  { %485 = vmatpush3.bf16.msra.mxu0 %v419_v2  ;;  %60 = vperm.xlu0 %512, %v54_v6   ;;  %v47_v8 = vsub.f32 %v420_v4, %v421_v5  ;;  %v49_v9 = vmul.f32 %v421_v5, %v420_v4  ;;  %v184_v14 = vld [vmem:[%s701_s4] sm:$0xff]  ;;  %v51_v16 = vld [vmem:[%s698_s1 + $0x8] sm:$0xff]  ;;  %v186_v18 = vld [vmem:[%s701_s4 + $0x10] sm:$0xff]  ;;  %s536_s22 = scalar_lea.vmem %s401_s21, 16  ;;  %s540_s23 = scalar_lea.vmem %s401_s21, 32 }
  0x1a   :  { %70 = vperm.xlu1 %513, %v56_v7   ;;  %v187_v19 = vld [vmem:[%s701_s4 + $0x18] sm:$0xff]  ;;  %v310_v21 = vld [vmem:[#allocation2] sm:$0x1]  ;;  %v181_v41 = vld [vmem:[%s700_s3 + $0x8] sm:$0xff]  ;;  %v317_v2 = vshrl.u32 %v316_v1, 7  ;;  %p537_p8 = scmp.ne.s32.totalorder %s401_s21, %s536_s22  ;;  %p541_p9 = scmp.lt.s32.totalorder %s401_s21, %s401_s21 }
  0x1b   :  { %v48_v12 = vand.u32 2147483647, %v47_v8  ;;  %v53_v20 = vld [vmem:[%s698_s1 + $0x18] sm:$0xff]  ;;  %v180_v22 = vld [vmem:[%s700_s3] sm:$0xff]  ;;  %v182_v42 = vld [vmem:[%s700_s3 + $0x10] sm:$0xff]  ;;  %p542_p10 = scmp.lt.s32.totalorder %s540_s23, %s536_s22 }
  0x1c   :  { %465 = vmatprep.mubr.msk.f32.mxu1 %vm78_vm0, %v180_v22  ;;  %v183_v43 = vld [vmem:[%s700_s3 + $0x18] sm:$0xff]  ;;  %v309_v0 = vld [vmem:[%s702_s5] sm:$0x1]  ;;  %v318_v3 = vsub.s32 0, %v317_v2 }
  0x1d   :  { %65 = vperm.xlu0 %512, %v55_v10   ;;  %v486_v13 = vpack.c.bf16 %v49_v9, %v48_v12  ;;  %p543_p11 = por %p542_p10, %p541_p9 }
  0x1e   :  { %75 = vperm.xlu1 %513, %v57_v11  }
  0x1f   :  { %487 = vmatprep.subr.bf16.mxu0 %v486_v13  ;;  %p544_p12 = pnand %p543_p11, %p537_p8 }
  0x20   :  { %489 = vmatpush3.bf16.msra.mxu0 %v486_v13 }
  0x21   :  { %190 = vperm.xlu0 %512, %v184_v14   ;;  %498 = vmatprep.subr.bf16.mxu0 %v566_v44 }
  0x22   :  { %195 = vperm.xlu1 %513, %v185_v15  }
  0x23   :  { %452 = vmatmul.mubr.msk.f32.vlgmr.msra.gmra.mrb[0].mxu0 %vm78_vm0, %v51_v16 }
  0x24   :  { %454 = vmatprep.mubr.msk.f32.mxu0 %vm78_vm0, %v52_v17 }
  0x25   :  { %200 = vperm.xlu0 %512, %v186_v18  }
  0x26   :  { %205 = vperm.xlu1 %513, %v187_v19  }
  0x27   :  { %455 = vmatmul.mubr.msk.f32.gmra.mrb[2].mxu0 %vm78_vm0, %v53_v20 }
  0x28   :  { %479 = vmatprep.mubr.msk.f32.mxu0 %vm567_vm1, %v568_v45 }
  0x29   :  { %313 = vperm.xlu0 %512, %v310_v21  }
  0x98   :  { %v61_v23 = vpop.permute.xlu0 %60 }
  0x99   :  { %v71_v24 = vpop.permute.xlu1 %70 }
  0x9c   :  { %v66_v25 = vpop.permute.xlu0 %65 }
  0x9d   :  { %v76_v31 = vpop.permute.xlu1 %75 }
  0xa0   :  { %v191_v47 = vpop.permute.xlu0 %190 }
  0xa1   :  { %v196_v46 = vpop.permute.xlu1 %195 }
  0xa4   :  { %v201_v56 = vpop.permute.xlu0 %200 }
  0xa5   :  { %v206_v53 = vpop.permute.xlu1 %205 }
  0xa8   :  { %v314_v4 = vpop.permute.xlu0 %313 }
  0xa9   :  { %v319_v5 = vrot.slane %v314_v4, %v318_v3 }
  0xf6   :  { %v453_v26 = vpop.f32.mrb[0].mxu0 }
  0xf7   :  { %v163_v27 = vadd.f32 %v453_v26, %v66_v25  ;;  %v157_v28 = vpop.f32.mrb[1].mxu0 }
  0xf8   :  { %v158_v29 = vadd.f32 %v157_v28, %v61_v23 }
  0xf9   :  { %v177_v30 = vmax.f32 %v163_v27, 0.0 }
  0xfa   :  { %v176_v32 = vmax.f32 %v158_v29, 0.0  ;;  %v456_v33 = vpop.f32.mrb[2].mxu0 }
  0xfb   :  { %v173_v34 = vadd.f32 %v456_v33, %v76_v31  ;;  %v167_v35 = vpop.f32.mrb[3].mxu0 }
  0xfc   :  { %v168_v36 = vadd.f32 %v167_v35, %v71_v24  ;;  %v490_v37 = vpack.c.bf16 %v177_v30, %v176_v32 }
  0xfd   :  { %v179_v38 = vmax.f32 %v173_v34, 0.0 }
  0xfe   :  { %v178_v39 = vmax.f32 %v168_v36, 0.0  ;;  %491 = vmatprep.subr.bf16.mxu1 %v490_v37 }
  0xff   :  { %493 = vmatpush3.bf16.msra.mxu1 %v490_v37 }
 0x100   :  { %v494_v40 = vpack.c.bf16 %v179_v38, %v178_v39 }
 0x102   :  { %495 = vmatprep.subr.bf16.mxu1 %v494_v40 }
 0x103   :  { %497 = vmatpush3.bf16.msra.mxu1 %v494_v40 }
 0x106   :  { %466 = vmatmul.mubr.msk.f32.vlgmr.msra.gmra.mrb[0].mxu1 %vm78_vm0, %v181_v41 }
 0x107   :  { %468 = vmatprep.mubr.msk.f32.mxu1 %vm78_vm0, %v182_v42 }
 0x10a   :  { %469 = vmatmul.mubr.msk.f32.gmra.mrb[2].mxu1 %vm78_vm0, %v183_v43 }
 0x1d9   :  { %v467_v48 = vpop.f32.mrb[0].mxu1 }
 0x1da   :  { %v292_v49 = vadd.f32 %v467_v48, %v196_v46  ;;  %v286_v50 = vpop.f32.mrb[1].mxu1 }
 0x1db   :  { %v287_v51 = vadd.f32 %v286_v50, %v191_v47 }
 0x1dc   :  { %v306_v52 = vmax.f32 %v292_v49, 0.0 }
 0x1dd   :  { %v305_v54 = vmax.f32 %v287_v51, 0.0  ;;  %v470_v55 = vpop.f32.mrb[2].mxu1 }
 0x1de   :  { %v302_v57 = vadd.f32 %v470_v55, %v206_v53  ;;  %v296_v58 = vpop.f32.mrb[3].mxu1 }
 0x1df   :  { %v499_v59 = vpack.c.bf16 %v306_v52, %v305_v54  ;;  %v297_v60 = vadd.f32 %v296_v58, %v201_v56 }
 0x1e0   :  { %v308_v61 = vmax.f32 %v302_v57, 0.0 }
 0x1e1   :  { %v307_v62 = vmax.f32 %v297_v60, 0.0  ;;  %500 = vmatpush3.bf16.msra.mxu0 %v499_v59 }
 0x1e2   :  { %501 = vmatprep.subr.bf16.mxu0 %v566_v44 }
 0x1e3   :  { %v502_v63 = vpack.c.bf16 %v308_v61, %v307_v62 }
 0x1e5   :  { %503 = vmatpush3.bf16.msra.mxu0 %v502_v63 }
 0x1e8   :  { %480 = vmatmul.mubr.msk.f32.vlgmr.msra.gmra.mrb[4].mxu0 %vm78_vm0, %v309_v0 }
 0x2bb   :  { %v389_v6 = vpop.f32.mrb[4].mxu0 }
 0x2bc   :  { %v390_v7 = vadd.f32 %v389_v6, %v319_v5  ;;  %v481_v8 = vpop.f32.mrb[5].mxu0 }
 0x2be   :  { %393 = vst [vmem:[#allocation6] sm:$0x1] %v390_v7 }
 0x2bf   :  { %547 = shalt.err (!%p544_p12)
}
 0x2c0   :  { %s548_s25 = scalar_lea.hbm %s704_s7, 16 }
 0x2c1   :  { %p549_p13 = scmp.ne.s32.totalorder %s704_s7, %s548_s25  ;;  %p552_p0 = scmp.lt.u32.totalorder %s548_s25, %s704_s7 }
 0x2c3   :  { %p554_p1 = pnand %p552_p0, %p549_p13 }
 0x2c5   :  { %557 = shalt.err (!%p554_p1)
}
 0x2c6   :  { %403 = dma.vmem_to_hbm [thread:$0]  %s401_s21, 16, %s704_s7, [#allocation5]  }
 0x2c7   :  { %560 = dma.done.wait [#allocation5], 16  }
 0x2c8   :  { %561 = vsyncadd [#allocation5], 4294967280 }
 0x2c9   :  { %407 = vsyncpa [#allocation4], 1 }
 0x2ca   :  { %408 = vsyncpa [#allocation5], 1 }

</bundles_post_ra>
